<compile_context>
chip_gen: v6e
topology: v6e:2x2x1
jax: 0.10.0
libtpu: 0.0.40
codegen_flags: <defaults>
</compile_context>

<pallas_src>
import functools

import jax
import jax.numpy as jnp
from jax.experimental import pallas as pl
from jax.experimental.pallas import tpu as pltpu


H_PAD = 128   # padded hidden width (lane-dense)
N_PAD = 128   # padded output width (lane-dense)


def _round_up(x, m):
    return ((x + m - 1) // m) * m


def _qnet_kernel(x_ref, w1_ref, b1_ref, w2_ref, b2_ref, w3_ref, b3_ref,
                 mask_ref, o_ref):
    """One batch tile: 3 bf16 MXU matmuls (f32 accum) + f32 bias/ReLU/mask, all in VMEM."""
    x = x_ref[...]                                                     # bf16 (TILE_B, obs_dims)

    h1 = jnp.dot(x, w1_ref[...], preferred_element_type=jnp.float32)   # f32 (TILE_B, 128)
    h1 = jnp.maximum(h1 + b1_ref[...], 0.0)

    h2 = jnp.dot(h1.astype(jnp.bfloat16), w2_ref[...],
                 preferred_element_type=jnp.float32)
    h2 = jnp.maximum(h2 + b2_ref[...], 0.0)

    q = jnp.dot(h2.astype(jnp.bfloat16), w3_ref[...],
                preferred_element_type=jnp.float32) + b3_ref[...]      # f32 (TILE_B, 128)

    # mask: rows with mask == 0 become -inf (int compare; broadcast (TILE_B,1) over lanes)
    q = jnp.where(mask_ref[...] == 0, -jnp.inf, q)
    o_ref[...] = q                                                     # unmasked 128-lane store


def _pad2d(x, rows, cols):
    return jnp.pad(x, ((0, rows - x.shape[0]), (0, cols - x.shape[1])))


def prepare_params(params):
    """One-time weight prep: pad hidden/output widths to 128 lanes, cast MXU operands
    to bf16; biases stay f32 (VPU work in f32). Weights are (in, out) layout."""
    w1, b1, w2, b2, w3, b3 = params
    obs_dims = w1.shape[0]
    w1p = _pad2d(w1, obs_dims, H_PAD).astype(jnp.bfloat16)
    b1p = _pad2d(b1, 1, H_PAD).astype(jnp.float32)
    w2p = _pad2d(w2, H_PAD, H_PAD).astype(jnp.bfloat16)
    b2p = _pad2d(b2, 1, H_PAD).astype(jnp.float32)
    w3p = _pad2d(w3, H_PAD, N_PAD).astype(jnp.bfloat16)
    b3p = _pad2d(b3, 1, N_PAD).astype(jnp.float32)
    return (w1p, b1p, w2p, b2p, w3p, b3p)


@functools.partial(jax.jit, static_argnames=("num_actions", "tile_b"))
def qnet_forward(obs, prepared_params, num_actions, mask=None, tile_b=1024):
    """Fused Q_Net forward.

    obs:  (B, obs_dims) f32 (cast to bf16 for the obs HBM stream / MXU).
    prepared_params: output of prepare_params().
    mask: optional (B,) — rows with mask == 0 get all Q-values set to -inf.
    Returns (B, num_actions) f32.
    """
    w1, b1, w2, b2, w3, b3 = prepared_params
    B, obs_dims = obs.shape
    n_pad = w3.shape[1]

    # Batch tile: multiple of 8 sublanes, capped at tile_b; pad B up to a multiple of it.
    tb = min(tile_b, _round_up(B, 8))
    b_pad = _round_up(B, tb)

    obs_p = obs.astype(jnp.bfloat16)
    if b_pad != B:
        obs_p = jnp.pad(obs_p, ((0, b_pad - B), (0, 0)))

    if mask is None:
        mask_p = jnp.ones((b_pad, 1), jnp.int32)
    else:
        mask_p = jnp.asarray(mask).reshape(B, 1).astype(jnp.int32)
        if b_pad != B:
            mask_p = jnp.pad(mask_p, ((0, b_pad - B), (0, 0)), constant_values=1)

    # Weights/biases: full-array blocks with constant index_map -> VMEM-resident across grid.
    resident = lambda a: pl.BlockSpec(a.shape, lambda i, _nd=a.ndim: (0,) * _nd)

    out = pl.pallas_call(
        _qnet_kernel,
        out_shape=jax.ShapeDtypeStruct((b_pad, n_pad), jnp.float32),
        grid=(b_pad // tb,),
        in_specs=[
            pl.BlockSpec((tb, obs_dims), lambda i: (i, 0)),   # obs: tiled over batch
            resident(w1), resident(b1),
            resident(w2), resident(b2),
            resident(w3), resident(b3),
            pl.BlockSpec((tb, 1), lambda i: (i, 0)),          # mask: tiled over batch
        ],
        out_specs=pl.BlockSpec((tb, n_pad), lambda i: (i, 0)),
        compiler_params=pltpu.CompilerParams(
            dimension_semantics=("parallel",),                # v7x: shard batch over 2 TCs
        ),
    )(obs_p, w1, b1, w2, b2, w3, b3, mask_p)

    return out[:B, :num_actions]


def init_params(key, obs_dims, num_actions, hidden1=64, hidden2=64):
    """Deterministic init mimicking torch.nn.Linear (U[-1/sqrt(fan_in), 1/sqrt(fan_in)]).
    Weights stored as (in, out) — transposed relative to PyTorch's (out, in)."""
    def linear(k, fan_in, fan_out):
        kw, kb = jax.random.split(k)
        bound = 1.0 / jnp.sqrt(fan_in)
        w = jax.random.uniform(kw, (fan_in, fan_out), jnp.float32, -bound, bound)
        b = jax.random.uniform(kb, (1, fan_out), jnp.float32, -bound, bound)
        return w, b

    k1, k2, k3 = jax.random.split(key, 3)
    w1, b1 = linear(k1, obs_dims, hidden1)
    w2, b2 = linear(k2, hidden1, hidden2)
    w3, b3 = linear(k3, hidden2, num_actions)
    return (w1, b1, w2, b2, w3, b3)


# TODO(synk): the PyTorch module's optimizer / learn() (Adam training step) is out of
# scope for a forward-pass kernel and is not implemented here.


if __name__ == "__main__":
    key = jax.random.PRNGKey(0)
    k_param, k_obs = jax.random.split(key)

    batch, obs_dims, num_actions = 2, 8, 4
    params = init_params(k_param, obs_dims, num_actions, hidden1=64, hidden2=64)
    prepped = prepare_params(params)
    obs = jax.random.normal(k_obs, (batch, obs_dims), jnp.float32)
    mask = jnp.array([1, 0], jnp.int32)   # second row masked to -inf

    # Unmasked forward
    q = qnet_forward(obs, prepped, num_actions)
    jax.block_until_ready(q)

    # Masked forward (PyTorch: action[i] = -inf where mask[i] == 0)
    q_masked = qnet_forward(obs, prepped, num_actions, mask=mask)
    jax.block_until_ready(q_masked)

    # Reference in plain JAX using the same numerical path (bf16 MXU operands, f32 accum)
    w1, b1, w2, b2, w3, b3 = params
    xb = obs.astype(jnp.bfloat16)
    h1 = jnp.maximum(
        jnp.dot(xb, w1.astype(jnp.bfloat16), preferred_element_type=jnp.float32) + b1, 0.0)
    h2 = jnp.maximum(
        jnp.dot(h1.astype(jnp.bfloat16), w2.astype(jnp.bfloat16),
                preferred_element_type=jnp.float32) + b2, 0.0)
    q_ref = jnp.dot(h2.astype(jnp.bfloat16), w3.astype(jnp.bfloat16),
                    preferred_element_type=jnp.float32) + b3

    assert q.shape == (batch, num_actions)
    assert jnp.allclose(q, q_ref, atol=1e-4, rtol=1e-4), "unmasked mismatch"

    q_ref_m = jnp.where(mask.reshape(-1, 1) == 0, -jnp.inf, q_ref)
    assert jnp.array_equal(jnp.isneginf(q_masked), jnp.isneginf(q_ref_m))
    assert jnp.allclose(
        jnp.where(jnp.isneginf(q_ref_m), 0.0, q_masked),
        jnp.where(jnp.isneginf(q_ref_m), 0.0, q_ref_m),
        atol=1e-4, rtol=1e-4), "masked mismatch"

    # Sanity vs. full-f32 reference (loose tolerance for bf16 MXU path)
    h1f = jnp.maximum(obs @ w1 + b1, 0.0)
    h2f = jnp.maximum(h1f @ w2 + b2, 0.0)
    q_f32 = h2f @ w3 + b3
    assert jnp.allclose(q, q_f32, atol=5e-2, rtol=5e-2), "f32 sanity mismatch"

    # Also exercise a batch that forces multiple grid steps + tail padding
    big_obs = jax.random.normal(jax.random.PRNGKey(7), (100, obs_dims), jnp.float32)
    q_big = qnet_forward(big_obs, prepped, num_actions, tile_b=32)
    jax.block_until_ready(q_big)
    assert q_big.shape == (100, num_actions)

    print("KERNEL_OK")
</pallas_src>

<mosaic_0001>
module attributes {stable_mosaic.version = 11 : i64} {
  func.func @_qnet_kernel(%arg0: i32, %arg1: memref<8x8xbf16, #tpu.memory_space<vmem>>, %arg2: memref<8x128xbf16, #tpu.memory_space<vmem>>, %arg3: memref<1x128xf32, #tpu.memory_space<vmem>>, %arg4: memref<128x128xbf16, #tpu.memory_space<vmem>>, %arg5: memref<1x128xf32, #tpu.memory_space<vmem>>, %arg6: memref<128x128xbf16, #tpu.memory_space<vmem>>, %arg7: memref<1x128xf32, #tpu.memory_space<vmem>>, %arg8: memref<8x1xi32, #tpu.memory_space<vmem>>, %arg9: memref<8x128xf32, #tpu.memory_space<vmem>>) attributes {dimension_semantics = [#tpu.dimension_semantics<parallel>], iteration_bounds = array<i64: 1>, scalar_prefetch = 0 : i64, scratch_operands = 0 : i64, tpu.core_type = #tpu.core_type<tc>, window_params = [{transform_indices = @transform_0, window_bounds = array<i64: 8, 8>}, {pipeline_mode = #tpu.pipeline_mode<synchronous>, transform_indices = @transform_1, window_bounds = array<i64: 8, 128>}, {pipeline_mode = #tpu.pipeline_mode<synchronous>, transform_indices = @transform_2, window_bounds = array<i64: 1, 128>}, {pipeline_mode = #tpu.pipeline_mode<synchronous>, transform_indices = @transform_3, window_bounds = array<i64: 128, 128>}, {pipeline_mode = #tpu.pipeline_mode<synchronous>, transform_indices = @transform_4, window_bounds = array<i64: 1, 128>}, {pipeline_mode = #tpu.pipeline_mode<synchronous>, transform_indices = @transform_5, window_bounds = array<i64: 128, 128>}, {pipeline_mode = #tpu.pipeline_mode<synchronous>, transform_indices = @transform_6, window_bounds = array<i64: 1, 128>}, {transform_indices = @transform_7, window_bounds = array<i64: 8, 1>}, {transform_indices = @transform_8, window_bounds = array<i64: 8, 128>}]} {
    %c0 = arith.constant 0 : index
    %c0_0 = arith.constant 0 : index
    %0 = vector.load %arg1[%c0, %c0_0] : memref<8x8xbf16, #tpu.memory_space<vmem>>, vector<8x8xbf16>
    %c0_1 = arith.constant 0 : index
    %c0_2 = arith.constant 0 : index
    %1 = vector.load %arg2[%c0_1, %c0_2] : memref<8x128xbf16, #tpu.memory_space<vmem>>, vector<8x128xbf16>
    %cst = arith.constant dense<0.000000e+00> : vector<8x128xf32>
    %2 = tpu.matmul %0, %1, %cst {dimension_numbers = #tpu.dot_dimension_numbers<[1], [0], [0], [1], [0, 0, 1, 1], [], []>} : vector<8x8xbf16>, vector<8x128xbf16>, vector<8x128xf32> -> vector<8x128xf32>
    %c0_3 = arith.constant 0 : index
    %c0_4 = arith.constant 0 : index
    %3 = vector.load %arg3[%c0_3, %c0_4] : memref<1x128xf32, #tpu.memory_space<vmem>>, vector<1x128xf32>
    %4 = vector.broadcast %3 : vector<1x128xf32> to vector<8x128xf32>
    %5 = arith.addf %2, %4 : vector<8x128xf32>
    %cst_5 = arith.constant 0.000000e+00 : f32
    %6 = vector.broadcast %cst_5 : f32 to vector<8x128xf32>
    %7 = arith.maximumf %5, %6 : vector<8x128xf32>
    %8 = arith.truncf %7 : vector<8x128xf32> to vector<8x128xbf16>
    %c0_6 = arith.constant 0 : index
    %c0_7 = arith.constant 0 : index
    %9 = vector.load %arg4[%c0_6, %c0_7] : memref<128x128xbf16, #tpu.memory_space<vmem>>, vector<128x128xbf16>
    %cst_8 = arith.constant dense<0.000000e+00> : vector<8x128xf32>
    %10 = tpu.matmul %8, %9, %cst_8 {dimension_numbers = #tpu.dot_dimension_numbers<[1], [0], [0], [1], [0, 0, 1, 1], [], []>} : vector<8x128xbf16>, vector<128x128xbf16>, vector<8x128xf32> -> vector<8x128xf32>
    %c0_9 = arith.constant 0 : index
    %c0_10 = arith.constant 0 : index
    %11 = vector.load %arg5[%c0_9, %c0_10] : memref<1x128xf32, #tpu.memory_space<vmem>>, vector<1x128xf32>
    %12 = vector.broadcast %11 : vector<1x128xf32> to vector<8x128xf32>
    %13 = arith.addf %10, %12 : vector<8x128xf32>
    %cst_11 = arith.constant 0.000000e+00 : f32
    %14 = vector.broadcast %cst_11 : f32 to vector<8x128xf32>
    %15 = arith.maximumf %13, %14 : vector<8x128xf32>
    %16 = arith.truncf %15 : vector<8x128xf32> to vector<8x128xbf16>
    %c0_12 = arith.constant 0 : index
    %c0_13 = arith.constant 0 : index
    %17 = vector.load %arg6[%c0_12, %c0_13] : memref<128x128xbf16, #tpu.memory_space<vmem>>, vector<128x128xbf16>
    %cst_14 = arith.constant dense<0.000000e+00> : vector<8x128xf32>
    %18 = tpu.matmul %16, %17, %cst_14 {dimension_numbers = #tpu.dot_dimension_numbers<[1], [0], [0], [1], [0, 0, 1, 1], [], []>} : vector<8x128xbf16>, vector<128x128xbf16>, vector<8x128xf32> -> vector<8x128xf32>
    %c0_15 = arith.constant 0 : index
    %c0_16 = arith.constant 0 : index
    %19 = vector.load %arg7[%c0_15, %c0_16] : memref<1x128xf32, #tpu.memory_space<vmem>>, vector<1x128xf32>
    %20 = vector.broadcast %19 : vector<1x128xf32> to vector<8x128xf32>
    %21 = arith.addf %18, %20 : vector<8x128xf32>
    %c0_17 = arith.constant 0 : index
    %c0_18 = arith.constant 0 : index
    %22 = vector.load %arg8[%c0_17, %c0_18] : memref<8x1xi32, #tpu.memory_space<vmem>>, vector<8x1xi32>
    %c0_i32 = arith.constant 0 : i32
    %23 = vector.broadcast %c0_i32 : i32 to vector<8x1xi32>
    %24 = arith.cmpi eq, %22, %23 : vector<8x1xi32>
    %cst_19 = arith.constant 0xFF800000 : f32
    %25 = vector.shape_cast %24 : vector<8x1xi1> to vector<8x1xi1>
    %26 = vector.broadcast %25 : vector<8x1xi1> to vector<8x128xi1>
    %27 = vector.broadcast %cst_19 : f32 to vector<8x128xf32>
    %28 = arith.select %26, %27, %21 : vector<8x128xi1>, vector<8x128xf32>
    %c0_20 = arith.constant 0 : index
    %c0_21 = arith.constant 0 : index
    %29 = vector.load %arg9[%c0_20, %c0_21] : memref<8x128xf32, #tpu.memory_space<vmem>>, vector<8x128xf32>
    tpu.vector_store %arg9[%c0_20, %c0_21], %28 {strides = array<i32>} : memref<8x128xf32, #tpu.memory_space<vmem>>, vector<8x128xf32>,
    return
  }
  func.func @transform_0(%arg0: i32) -> (i32, i32) {
    %c0_i32 = arith.constant 0 : i32
    %c0_i32_0 = arith.constant 0 : i32
    return %arg0, %c0_i32 : i32, i32
  }
  func.func @transform_1(%arg0: i32) -> (i32, i32) {
    %c0_i32 = arith.constant 0 : i32
    %c0_i32_0 = arith.constant 0 : i32
    %c0_i32_1 = arith.constant 0 : i32
    return %c0_i32, %c0_i32_0 : i32, i32
  }
  func.func @transform_2(%arg0: i32) -> (i32, i32) {
    %c0_i32 = arith.constant 0 : i32
    %c0_i32_0 = arith.constant 0 : i32
    %c0_i32_1 = arith.constant 0 : i32
    return %c0_i32, %c0_i32_0 : i32, i32
  }
  func.func @transform_3(%arg0: i32) -> (i32, i32) {
    %c0_i32 = arith.constant 0 : i32
    %c0_i32_0 = arith.constant 0 : i32
    %c0_i32_1 = arith.constant 0 : i32
    return %c0_i32, %c0_i32_0 : i32, i32
  }
  func.func @transform_4(%arg0: i32) -> (i32, i32) {
    %c0_i32 = arith.constant 0 : i32
    %c0_i32_0 = arith.constant 0 : i32
    %c0_i32_1 = arith.constant 0 : i32
    return %c0_i32, %c0_i32_0 : i32, i32
  }
  func.func @transform_5(%arg0: i32) -> (i32, i32) {
    %c0_i32 = arith.constant 0 : i32
    %c0_i32_0 = arith.constant 0 : i32
    %c0_i32_1 = arith.constant 0 : i32
    return %c0_i32, %c0_i32_0 : i32, i32
  }
  func.func @transform_6(%arg0: i32) -> (i32, i32) {
    %c0_i32 = arith.constant 0 : i32
    %c0_i32_0 = arith.constant 0 : i32
    %c0_i32_1 = arith.constant 0 : i32
    return %c0_i32, %c0_i32_0 : i32, i32
  }
  func.func @transform_7(%arg0: i32) -> (i32, i32) {
    %c0_i32 = arith.constant 0 : i32
    %c0_i32_0 = arith.constant 0 : i32
    return %arg0, %c0_i32 : i32, i32
  }
  func.func @transform_8(%arg0: i32) -> (i32, i32) {
    %c0_i32 = arith.constant 0 : i32
    %c0_i32_0 = arith.constant 0 : i32
    return %arg0, %c0_i32 : i32, i32
  }
}

</mosaic_0001>

<bundles_post_ra>
// kernel: qnet_forward.1
= control target key start
LH: loop header
LB: loop body
LE: loop exit
PB: predicated region body
PF: predicated region fallthrough
CT: control target
= control target key end

     0   :  { %13 = vsyncpa [#allocation3], 0  ;;  %s612_s0 = inlined_call_operand.vmem [shape: bf16[8,8], index: 0, kind: input, shape index: {}]   ;;  %s613_s1 = inlined_call_operand.vmem [shape: bf16[8,128], index: 1, kind: input, shape index: {}]   ;;  %s614_s2 = inlined_call_operand.vmem [shape: f32[1,128], index: 2, kind: input, shape index: {}]   ;;  %s615_s3 = inlined_call_operand.hbm [shape: bf16[128,128], index: 3, kind: input, shape index: {}]   ;;  %s616_s4 = inlined_call_operand.vmem [shape: f32[1,128], index: 4, kind: input, shape index: {}]   ;;  %s617_s5 = inlined_call_operand.hbm [shape: bf16[128,128], index: 5, kind: input, shape index: {}]   ;;  %s618_s6 = inlined_call_operand.vmem [shape: f32[1,128], index: 6, kind: input, shape index: {}]   ;;  %s619_s7 = inlined_call_operand.vmem [shape: s32[8,1], index: 7, kind: input, shape index: {}]   ;;  %s620_s8 = inlined_call_operand.vmem [shape: f32[8,128], index: 8, kind: output, shape index: {}]  }
   0x1   :  { %14 = vsyncpa [#allocation5], 0  ;;  %s510_s27 = smov [#allocation2]  }
   0x2   :  { %s26_s28 = sshll.u32 %s510_s27, 4  ;;  %s27_s28 = int_to_ptr.vmem [resolvable:$true] %s26_s28 }
   0x3   :  { %s474_s29 = scalar_lea.vmem %s27_s28, 1024  ;;  %p479_p1 = scmp.lt.s32.totalorder %s27_s28, %s27_s28 }
   0x4   :  { %p475_p0 = scmp.ne.s32.totalorder %s27_s28, %s474_s29  ;;  %p480_p2 = scmp.lt.s32.totalorder %s474_s29, %s474_s29 }
   0x6   :  { %p481_p3 = por %p480_p2, %p479_p1 }
   0x8   :  { %p482_p4 = pnand %p481_p3, %p475_p0 }
   0xa   :  { %485 = shalt.err (!%p482_p4)
}
   0xb   :  { %s511_s30 = smov 64   ;;  %s512_s9 = smov 4  }
   0xc   :  { %32 = dma.hbm_to_vmem [thread:$0]  %s615_s3, 1024, %s27_s28, [#allocation3], %s511_s30, %s511_s30, %s512_s9  }
   0xd   :  { %s513_s12 = smov [#allocation4]  }
   0xe   :  { %s40_s13 = sshll.u32 %s513_s12, 4  ;;  %s41_s13 = int_to_ptr.vmem [resolvable:$true] %s40_s13 }
   0xf   :  { %s494_s14 = scalar_lea.vmem %s41_s13, 1024  ;;  %p499_p6 = scmp.lt.s32.totalorder %s41_s13, %s41_s13 }
  0x10   :  { %p495_p5 = scmp.ne.s32.totalorder %s41_s13, %s494_s14  ;;  %p500_p7 = scmp.lt.s32.totalorder %s494_s14, %s494_s14 }
  0x12   :  { %p501_p8 = por %p500_p7, %p499_p6 }
  0x14   :  { %p502_p9 = pnand %p501_p8, %p495_p5 }
  0x16   :  { %505 = shalt.err (!%p502_p9)
}
  0x17   :  { %46 = dma.hbm_to_vmem [thread:$0]  %s617_s5, 1024, %s41_s13, [#allocation5], %s511_s30, %s511_s30, %s512_s9  }
  0x18   :  { %506 = dma.done.wait [#allocation3], 1024  }
  0x19   :  { %507 = vsyncadd [#allocation3], 4294966272 }
  0x1a   :  { %508 = dma.done.wait [#allocation5], 1024  }
  0x1b   :  { %509 = vsyncadd [#allocation5], 4294966272  ;;  %v514_v0 = vmov 0.0   ;;  %vm515_vm0 = vmmov 0   ;;  %vm71_vm1 = vcmask 1043456   ;;  %vm67_vm2 = vcmask 64512  }
  0x1c   :  { %396 = vmatprep.subr.bf16.mxu0 %v514_v0  ;;  %398 = vmatprep.mubr.msk.bf16.mxu0 %vm515_vm0, %v514_v0  ;;  %v59_v1 = vld [vmem:[%s613_s1] sm:$0xf]  ;;  %v450_v3 = vld [vmem:[#allocation2 + $0x38] sm:$0xff]   ;;  %v451_v5 = vld [vmem:[#allocation2 + $0x30] sm:$0xff]   ;;  %v516_v29 = vmov 0  }
  0x1d   :  { %402 = vmatprep.subr.bf16.mxu1 %v514_v0  ;;  %418 = vmatprep.mubr.msk.bf16.mxu1 %vm515_vm0, %v514_v0  ;;  %v73_v2 = vsel %vm71_vm1, %v59_v1, 0  ;;  %v58_v4 = vld [vmem:[%s612_s0] sm:$0xf]  ;;  %v452_v6 = vld [vmem:[#allocation2 + $0x28] sm:$0xff]   ;;  %v454_v8 = vld [vmem:[#allocation2 + $0x18] sm:$0xff]  }
  0x1e   :  { %397 = vmatpush3.bf16.msra.mxu0 %v73_v2  ;;  %403 = vmatpush3.bf16.msra.mxu1 %v450_v3  ;;  %v453_v7 = vld [vmem:[#allocation2 + $0x20] sm:$0xff]   ;;  %v455_v9 = vld [vmem:[#allocation2 + $0x10] sm:$0xff]   ;;  %v456_v10 = vld [vmem:[#allocation2 + $0x8] sm:$0xff]  }
  0x1f   :  { %422 = vmatprep.subr.bf16.mxu0 %v514_v0  ;;  %404 = vmatprep.subr.bf16.mxu1 %v514_v0  ;;  %v457_v11 = vld [vmem:[#allocation2] sm:$0xff]   ;;  %v458_v12 = vld [vmem:[#allocation4 + $0x38] sm:$0xff]   ;;  %v459_v13 = vld [vmem:[#allocation4 + $0x30] sm:$0xff]  }
  0x20   :  { %v460_v14 = vld [vmem:[#allocation4 + $0x28] sm:$0xff]   ;;  %v461_v15 = vld [vmem:[#allocation4 + $0x20] sm:$0xff]   ;;  %v462_v16 = vld [vmem:[#allocation4 + $0x18] sm:$0xff]   ;;  %449 = vset.pattern.permute.xlu0 %v516_v29 }
  0x21   :  { %399 = vmatmul.mubr.msk.bf16.vlgmr.msra.gmra.mxu0 %vm67_vm2, %v58_v4  ;;  %v463_v17 = vld [vmem:[#allocation4 + $0x10] sm:$0xff]   ;;  %v356_v18 = vld [vmem:[%s614_s2] ss:$0 sm:$0xff]  ;;  %v464_v26 = vld [vmem:[#allocation4 + $0x8] sm:$0xff]  }
  0x22   :  { %438 = vmatprep.mubr.msk.bf16.mxu0 %vm515_vm0, %v514_v0  ;;  %405 = vmatpush3.bf16.msra.mxu1 %v451_v5  ;;  %v465_v27 = vld [vmem:[#allocation4] sm:$0xff]  }
  0x23   :  { %406 = vmatprep.subr.bf16.mxu1 %v514_v0  ;;  %423 = vmatpush3.bf16.msra.mxu0 %v458_v12  ;;  %v341_v28 = vld [vmem:[%s619_s7] sm:$0xff] }
  0x24   :  { %424 = vmatprep.subr.bf16.mxu0 %v514_v0  ;;  %vm342_vm3 = vcmp.eq.s32.totalorder %v341_v28, 0  ;;  %v358_v31 = vld [vmem:[%s616_s4] ss:$0 sm:$0xff] }
  0x25   :  { %v343_v30 = vsel %vm342_vm3, 1, %v516_v29  ;;  %v367_v40 = vld [vmem:[%s618_s6] ss:$0 sm:$0xff] }
  0x26   :  { %407 = vmatpush3.bf16.msra.mxu1 %v452_v6  ;;  %345 = vperm.xlu0 %449, %v343_v30  }
  0x27   :  { %408 = vmatprep.subr.bf16.mxu1 %v514_v0  ;;  %425 = vmatpush3.bf16.msra.mxu0 %v459_v13 }
  0x28   :  { %426 = vmatprep.subr.bf16.mxu0 %v514_v0 }
  0x2a   :  { %409 = vmatpush3.bf16.msra.mxu1 %v453_v7 }
  0x2b   :  { %410 = vmatprep.subr.bf16.mxu1 %v514_v0  ;;  %427 = vmatpush3.bf16.msra.mxu0 %v460_v14 }
  0x2c   :  { %428 = vmatprep.subr.bf16.mxu0 %v514_v0 }
  0x2e   :  { %411 = vmatpush3.bf16.msra.mxu1 %v454_v8 }
  0x2f   :  { %412 = vmatprep.subr.bf16.mxu1 %v514_v0  ;;  %429 = vmatpush3.bf16.msra.mxu0 %v461_v15 }
  0x30   :  { %430 = vmatprep.subr.bf16.mxu0 %v514_v0 }
  0x32   :  { %413 = vmatpush3.bf16.msra.mxu1 %v455_v9 }
  0x33   :  { %414 = vmatprep.subr.bf16.mxu1 %v514_v0  ;;  %431 = vmatpush3.bf16.msra.mxu0 %v462_v16 }
  0x34   :  { %432 = vmatprep.subr.bf16.mxu0 %v514_v0 }
  0x36   :  { %415 = vmatpush3.bf16.msra.mxu1 %v456_v10 }
  0x37   :  { %416 = vmatprep.subr.bf16.mxu1 %v514_v0  ;;  %433 = vmatpush3.bf16.msra.mxu0 %v463_v17 }
  0x38   :  { %434 = vmatprep.subr.bf16.mxu0 %v514_v0 }
  0x3a   :  { %417 = vmatpush3.bf16.msra.mxu1 %v457_v11 }
  0x3b   :  { %435 = vmatpush3.bf16.msra.mxu0 %v464_v26 }
  0x3c   :  { %436 = vmatprep.subr.bf16.mxu0 %v514_v0 }
  0x3f   :  { %437 = vmatpush3.bf16.msra.mxu0 %v465_v27 }
  0xa1   :  { %v346_v39 = vpop.permute.xlu0 %345 }
  0xa2   :  { %vm347_vm4 = vcmp.eq.s32.totalorder %v346_v39, 1 }
  0xe1   :  { %v109_v19 = vpop.f32.mrf.mxu0 }
  0xe2   :  { %v110_v20 = vadd.f32 %v356_v18, %v109_v19 }
  0xe3   :  { %v400_v21 = vpop.f32.mrf.mxu0 }
  0xe4   :  { %v115_v22 = vmax.f32 %v110_v20, 0.0 }
  0xe5   :  { %v112_v23 = vpop.f32.mrf.mxu0 }
  0xe6   :  { %v116_v24 = vpack.c.bf16 %v115_v22, %v115_v22 }
  0xe7   :  { %v401_v25 = vpop.f32.mrf.mxu0 }
  0xe8   :  { %419 = vmatmul.mubr.bf16.vlgmr.msra.gmra.mxu1 %v116_v24 }
 0x1a8   :  { %v222_v32 = vpop.f32.mrf.mxu1 }
 0x1a9   :  { %v223_v33 = vadd.f32 %v358_v31, %v222_v32 }
 0x1aa   :  { %v420_v34 = vpop.f32.mrf.mxu1 }
 0x1ab   :  { %v228_v35 = vmax.f32 %v223_v33, 0.0 }
 0x1ac   :  { %v225_v36 = vpop.f32.mrf.mxu1 }
 0x1ad   :  { %v229_v37 = vpack.c.bf16 %v228_v35, %v228_v35 }
 0x1ae   :  { %v421_v38 = vpop.f32.mrf.mxu1 }
 0x1af   :  { %439 = vmatmul.mubr.bf16.vlgmr.msra.gmra.mxu0 %v229_v37 }
 0x26f   :  { %v335_v41 = vpop.f32.mrf.mxu0 }
 0x270   :  { %v336_v42 = vadd.f32 %v367_v40, %v335_v41 }
 0x271   :  { %v440_v43 = vpop.f32.mrf.mxu0 }
 0x272   :  { %v348_v44 = vsel %vm347_vm4, -inf, %v336_v42 }
 0x273   :  { %349 = vst [vmem:[%s620_s8] sm:$0xff] %v348_v44  ;;  %v338_v45 = vpop.f32.mrf.mxu0 }
 0x275   :  { %v441_v46 = vpop.f32.mrf.mxu0 }
 0x276   :  { %354 = vsyncpa [#allocation3], 1 }
 0x277   :  { %355 = vsyncpa [#allocation5], 1 }

</bundles_post_ra>
